<compile_context>
chip_gen: v5e
topology: v5e:2x2
jax: 0.10.0
libtpu: 0.0.40
codegen_flags: <defaults>
</compile_context>

<pallas_src>
import jax
import jax.numpy as jnp
from jax.experimental import pallas as pl
from jax.experimental.pallas import tpu as pltpu

LANE = 128      # lane width (last dim of a vreg tile)
SUB = 8         # sublane width (f32)
BIAS_ROWS = 16  # bf16 packs 16 rows per sublane tile; keep slices tile-aligned


def _round_up(n, m):
    return (n + m - 1) // m * m


def _cdiv(a, b):
    return (a + b - 1) // b


# ---------------------------------------------------------------------------
# Kernel
# ---------------------------------------------------------------------------
def _make_mlp_kernel(in_pad):
    """Build the fused MLP kernel for a given padded input width.

    Packed parameter slab (bf16, (in_pad + 2*128 + 16, 128)):
        rows [0, in_pad)                : W1 zero-padded to (in_pad, 128)
        rows [in_pad, in_pad+128)       : W2 zero-padded to (128, 128)
        rows [in_pad+128, in_pad+256)   : W3 zero-padded to (128, 128)
        rows [in_pad+256, in_pad+272)   : biases; row 0=b1, 1=b2, 2=b3, rest 0
    """
    w1_r0 = 0
    w2_r0 = in_pad
    w3_r0 = in_pad + LANE
    b_r0 = in_pad + 2 * LANE

    def kernel(x_ref, p_ref, o_ref):
        out_lanes = o_ref.shape[-1]

        x = x_ref[...]                                   # (tb, in_pad) bf16
        w1 = p_ref[w1_r0:w2_r0, :]                       # (in_pad, 128) bf16
        w2 = p_ref[w2_r0:w3_r0, :]                       # (128, 128)    bf16
        w3 = p_ref[w3_r0:b_r0, :]                        # (128, 128)    bf16
        bias = p_ref[b_r0:b_r0 + BIAS_ROWS, :].astype(jnp.float32)  # (16, 128)
        b1 = bias[0:1, :]
        b2 = bias[1:2, :]
        b3 = bias[2:3, :]

        # bf16 operands on the MXU, f32 accumulation; bias + ReLU in f32.
        h1 = jnp.dot(x, w1, preferred_element_type=jnp.float32)
        h1 = jnp.maximum(h1 + b1, 0.0)
        h2 = jnp.dot(h1.astype(jnp.bfloat16), w2,
                     preferred_element_type=jnp.float32)
        h2 = jnp.maximum(h2 + b2, 0.0)
        out = jnp.dot(h2.astype(jnp.bfloat16), w3,
                      preferred_element_type=jnp.float32) + b3      # (tb, 128)
        # Only the first out_lanes lanes are written back (lane-narrow output).
        o_ref[...] = out[:, 0:out_lanes].astype(o_ref.dtype)

    return kernel


# ---------------------------------------------------------------------------
# Parameter packing (one lane-aligned bf16 buffer -> one resident DMA)
# ---------------------------------------------------------------------------
def pack_params(w1, b1, w2, b2, w3, b3):
    in_features, hidden1 = w1.shape
    hidden2 = w2.shape[1]
    out_size = w3.shape[1]
    assert hidden1 <= LANE and hidden2 <= LANE and out_size <= LANE, \
        "this packing assumes hidden/output dims <= 128"
    in_pad = _round_up(in_features, 16)  # bf16 sublane-pair friendly offsets

    def pad_w(w, rows):
        w = w.astype(jnp.bfloat16)
        return jnp.pad(w, ((0, rows - w.shape[0]), (0, LANE - w.shape[1])))

    def pad_b(b):
        b = b.reshape(1, -1).astype(jnp.bfloat16)
        return jnp.pad(b, ((0, 0), (0, LANE - b.shape[1])))

    bias_blk = jnp.concatenate(
        [pad_b(b1), pad_b(b2), pad_b(b3),
         jnp.zeros((BIAS_ROWS - 3, LANE), jnp.bfloat16)], axis=0)  # (16, 128)
    packed = jnp.concatenate(
        [pad_w(w1, in_pad), pad_w(w2, LANE), pad_w(w3, LANE), bias_blk], axis=0)
    return packed, in_pad


# ---------------------------------------------------------------------------
# Wrapper
# ---------------------------------------------------------------------------
def _dual_tensorcore():
    """Best-effort detection of dual-TensorCore chips (v7x). Defaults False."""
    try:
        kind = jax.devices()[0].device_kind.lower()
    except Exception:
        return False
    return ("v7" in kind) or ("7x" in kind)


def pruned_cancernet_fc(x, w1, b1, w2, b2, w3, b3, *, block_batch=1024):
    """Fused forward pass: relu(x@W1+b1) -> relu(@W2+b2) -> @W3+b3."""
    batch, in_features = x.shape
    out_size = w3.shape[1]
    out_lanes = min(LANE, _round_up(out_size, SUB))

    packed, in_pad = pack_params(w1, b1, w2, b2, w3, b3)
    n_rows = packed.shape[0]

    # Batch tiling: split into near-equal tiles so round-up waste is bounded.
    # On dual-TC chips keep an even grid of >= 2 steps (when the batch is big
    # enough to be worth it) so the "parallel" axis shards across both cores;
    # on single-TC chips (v5e/v6e) keep the largest tile / fewest steps.
    b8 = _round_up(max(batch, SUB), SUB)
    n_tiles = _cdiv(b8, block_batch)
    if _dual_tensorcore() and b8 >= 256:
        n_tiles = max(n_tiles, 2)
        n_tiles += n_tiles % 2
    tb = _round_up(_cdiv(b8, n_tiles), SUB)
    b_pad = tb * n_tiles

    # x: bf16, feature dim padded only to in_pad (32 here, not 128).
    x_p = jnp.pad(x.astype(jnp.bfloat16),
                  ((0, b_pad - batch), (0, in_pad - in_features)))

    kernel = _make_mlp_kernel(in_pad)

    cost = pl.CostEstimate(
        flops=2 * b_pad * (in_pad * LANE + LANE * LANE + LANE * LANE),
        transcendentals=0,
        bytes_accessed=x_p.size * 2 + packed.size * 2 + b_pad * out_lanes * 4,
    )

    out = pl.pallas_call(
        kernel,
        out_shape=jax.ShapeDtypeStruct((b_pad, out_lanes), jnp.float32),
        grid=(n_tiles,),
        in_specs=[
            # x: tiled over the batch grid axis; block last dim == full dim.
            pl.BlockSpec((tb, in_pad), lambda i: (i, 0)),
            # Packed params: constant index -> fetched once, resident in VMEM.
            # TODO(synk): pipeline_mode=pl.Buffered(1) would drop the redundant
            # second ~75 KiB buffer; skipped since it is negligible at bf16.
            pl.BlockSpec((n_rows, LANE), lambda i: (0, 0)),
        ],
        out_specs=pl.BlockSpec((tb, out_lanes), lambda i: (i, 0)),
        compiler_params=pltpu.CompilerParams(
            dimension_semantics=("parallel",)),
        cost_estimate=cost,
    )(x_p, packed)

    return out[:batch, :out_size]


# ---------------------------------------------------------------------------
# Init + reference
# ---------------------------------------------------------------------------
def init_params(key, input_size, hidden_size1, hidden_size2, output_size):
    """Deterministic init mimicking nn.Linear's uniform(-1/sqrt(fan_in), ...).
    Weights stored (in, out) for the kernel's x @ W convention."""
    ks = jax.random.split(key, 6)

    def lin(kw, kb, fan_in, fan_out):
        bound = 1.0 / jnp.sqrt(float(fan_in))
        w = jax.random.uniform(kw, (fan_in, fan_out), jnp.float32, -bound, bound)
        b = jax.random.uniform(kb, (1, fan_out), jnp.float32, -bound, bound)
        return w, b

    w1, b1 = lin(ks[0], ks[1], input_size, hidden_size1)
    w2, b2 = lin(ks[2], ks[3], hidden_size1, hidden_size2)
    w3, b3 = lin(ks[4], ks[5], hidden_size2, output_size)
    return w1, b1, w2, b2, w3, b3


def reference_forward(x, w1, b1, w2, b2, w3, b3):
    """Mirrors the kernel numerics: bf16 matmul operands, f32 accumulation."""
    bf, f32 = jnp.bfloat16, jnp.float32
    h1 = jnp.dot(x.astype(bf), w1.astype(bf), preferred_element_type=f32)
    h1 = jnp.maximum(h1 + b1.astype(bf).astype(f32), 0.0)
    h2 = jnp.dot(h1.astype(bf), w2.astype(bf), preferred_element_type=f32)
    h2 = jnp.maximum(h2 + b2.astype(bf).astype(f32), 0.0)
    return (jnp.dot(h2.astype(bf), w3.astype(bf), preferred_element_type=f32)
            + b3.astype(bf).astype(f32))


if __name__ == "__main__":
    # Shapes consistent with the module: input_size=30 (breast-cancer features),
    # hidden1=32, hidden2=16, output=2.
    input_size, hidden1, hidden2, output_size = 30, 32, 16, 2

    key = jax.random.PRNGKey(0)
    kx, kp, kx2 = jax.random.split(key, 3)
    params = init_params(kp, input_size, hidden1, hidden2, output_size)

    # Small config (batch=4): single grid step.
    x = jax.random.normal(kx, (4, input_size), jnp.float32)
    out = jax.block_until_ready(pruned_cancernet_fc(x, *params))
    ref = reference_forward(x, *params)
    assert out.shape == (4, output_size)
    assert jnp.allclose(out, ref, atol=1e-2, rtol=1e-2), "mismatch (batch=4)"

    # Larger batch: exercises the batch tiling / resident-weight path
    # (and the dual-core split on v7x).
    x_big = jax.random.normal(kx2, (300, input_size), jnp.float32)
    out_big = jax.block_until_ready(pruned_cancernet_fc(x_big, *params))
    ref_big = reference_forward(x_big, *params)
    assert out_big.shape == (300, output_size)
    assert jnp.allclose(out_big, ref_big, atol=1e-2, rtol=1e-2), \
        "mismatch (batch=300)"

    print("KERNEL_OK")
</pallas_src>

<mosaic_0001>
module attributes {stable_mosaic.version = 11 : i64} {
  func.func @kernel(%arg0: i32, %arg1: memref<8x32xbf16, #tpu.memory_space<vmem>>, %arg2: memref<304x128xbf16, #tpu.memory_space<vmem>>, %arg3: memref<8x8xf32, #tpu.memory_space<vmem>>) attributes {dimension_semantics = [#tpu.dimension_semantics<parallel>], iteration_bounds = array<i64: 1>, scalar_prefetch = 0 : i64, scratch_operands = 0 : i64, tpu.core_type = #tpu.core_type<tc>, window_params = [{transform_indices = @transform_0, window_bounds = array<i64: 8, 32>}, {pipeline_mode = #tpu.pipeline_mode<synchronous>, transform_indices = @transform_1, window_bounds = array<i64: 304, 128>}, {transform_indices = @transform_2, window_bounds = array<i64: 8, 8>}]} {
    %c0 = arith.constant 0 : index
    %c0_0 = arith.constant 0 : index
    %0 = vector.load %arg1[%c0, %c0_0] : memref<8x32xbf16, #tpu.memory_space<vmem>>, vector<8x32xbf16>
    %c0_1 = arith.constant 0 : index
    %c0_2 = arith.constant 0 : index
    %1 = vector.load %arg2[%c0_1, %c0_2] : memref<304x128xbf16, #tpu.memory_space<vmem>>, vector<32x128xbf16>
    %c32 = arith.constant 32 : index
    %c0_3 = arith.constant 0 : index
    %2 = vector.load %arg2[%c32, %c0_3] : memref<304x128xbf16, #tpu.memory_space<vmem>>, vector<128x128xbf16>
    %c160 = arith.constant 160 : index
    %c0_4 = arith.constant 0 : index
    %3 = vector.load %arg2[%c160, %c0_4] : memref<304x128xbf16, #tpu.memory_space<vmem>>, vector<128x128xbf16>
    %c288 = arith.constant 288 : index
    %c0_5 = arith.constant 0 : index
    %4 = vector.load %arg2[%c288, %c0_5] : memref<304x128xbf16, #tpu.memory_space<vmem>>, vector<16x128xbf16>
    %5 = arith.extf %4 : vector<16x128xbf16> to vector<16x128xf32>
    %6 = vector.extract_strided_slice %5 {offsets = [0, 0], sizes = [1, 128], strides = [1, 1]} : vector<16x128xf32> to vector<1x128xf32>
    %7 = vector.extract_strided_slice %5 {offsets = [1, 0], sizes = [1, 128], strides = [1, 1]} : vector<16x128xf32> to vector<1x128xf32>
    %8 = vector.extract_strided_slice %5 {offsets = [2, 0], sizes = [1, 128], strides = [1, 1]} : vector<16x128xf32> to vector<1x128xf32>
    %cst = arith.constant dense<0.000000e+00> : vector<8x128xf32>
    %9 = tpu.matmul %0, %1, %cst {dimension_numbers = #tpu.dot_dimension_numbers<[1], [0], [0], [1], [0, 0, 1, 1], [], []>} : vector<8x32xbf16>, vector<32x128xbf16>, vector<8x128xf32> -> vector<8x128xf32>
    %10 = vector.broadcast %6 : vector<1x128xf32> to vector<8x128xf32>
    %11 = arith.addf %9, %10 : vector<8x128xf32>
    %cst_6 = arith.constant 0.000000e+00 : f32
    %12 = vector.broadcast %cst_6 : f32 to vector<8x128xf32>
    %13 = arith.maximumf %11, %12 : vector<8x128xf32>
    %14 = arith.truncf %13 : vector<8x128xf32> to vector<8x128xbf16>
    %cst_7 = arith.constant dense<0.000000e+00> : vector<8x128xf32>
    %15 = tpu.matmul %14, %2, %cst_7 {dimension_numbers = #tpu.dot_dimension_numbers<[1], [0], [0], [1], [0, 0, 1, 1], [], []>} : vector<8x128xbf16>, vector<128x128xbf16>, vector<8x128xf32> -> vector<8x128xf32>
    %16 = vector.broadcast %7 : vector<1x128xf32> to vector<8x128xf32>
    %17 = arith.addf %15, %16 : vector<8x128xf32>
    %cst_8 = arith.constant 0.000000e+00 : f32
    %18 = vector.broadcast %cst_8 : f32 to vector<8x128xf32>
    %19 = arith.maximumf %17, %18 : vector<8x128xf32>
    %20 = arith.truncf %19 : vector<8x128xf32> to vector<8x128xbf16>
    %cst_9 = arith.constant dense<0.000000e+00> : vector<8x128xf32>
    %21 = tpu.matmul %20, %3, %cst_9 {dimension_numbers = #tpu.dot_dimension_numbers<[1], [0], [0], [1], [0, 0, 1, 1], [], []>} : vector<8x128xbf16>, vector<128x128xbf16>, vector<8x128xf32> -> vector<8x128xf32>
    %22 = vector.broadcast %8 : vector<1x128xf32> to vector<8x128xf32>
    %23 = arith.addf %21, %22 : vector<8x128xf32>
    %24 = vector.extract_strided_slice %23 {offsets = [0, 0], sizes = [8, 8], strides = [1, 1]} : vector<8x128xf32> to vector<8x8xf32>
    %c0_10 = arith.constant 0 : index
    %c0_11 = arith.constant 0 : index
    %25 = vector.load %arg3[%c0_10, %c0_11] : memref<8x8xf32, #tpu.memory_space<vmem>>, vector<8x8xf32>
    tpu.vector_store %arg3[%c0_10, %c0_11], %24 {strides = array<i32>} : memref<8x8xf32, #tpu.memory_space<vmem>>, vector<8x8xf32>,
    return
  }
  func.func @transform_0(%arg0: i32) -> (i32, i32) {
    %c0_i32 = arith.constant 0 : i32
    %c0_i32_0 = arith.constant 0 : i32
    return %arg0, %c0_i32 : i32, i32
  }
  func.func @transform_1(%arg0: i32) -> (i32, i32) {
    %c0_i32 = arith.constant 0 : i32
    %c0_i32_0 = arith.constant 0 : i32
    %c0_i32_1 = arith.constant 0 : i32
    return %c0_i32, %c0_i32_0 : i32, i32
  }
  func.func @transform_2(%arg0: i32) -> (i32, i32) {
    %c0_i32 = arith.constant 0 : i32
    %c0_i32_0 = arith.constant 0 : i32
    return %arg0, %c0_i32 : i32, i32
  }
}

</mosaic_0001>

<bundles_post_ra>
// kernel: tpu_custom_call.1
= control target key start
LH: loop header
LB: loop body
LE: loop exit
PB: predicated region body
PF: predicated region fallthrough
CT: control target
= control target key end

     0   :  { %7 = vsyncpa [#allocation3], 0  ;;  %s463_s0 = inlined_call_operand.hbm [shape: bf16[8,32], index: 0, kind: input, shape index: {}]   ;;  %s464_s1 = inlined_call_operand.hbm [shape: bf16[304,128], index: 1, kind: input, shape index: {}]   ;;  %s465_s2 = inlined_call_operand.hbm [shape: f32[8,8], index: 2, kind: output, shape index: {}]  }
   0x1   :  { %8 = vsyncpa [#allocation6], 0 }
   0x2   :  { %9 = vsyncpa [#allocation4], 0  ;;  %s15_s11 = sshll.u32 %s463_s0, 4  ;;  %s434_s12 = smov [#allocation2]   ;;  %s16_s11 = int_to_ptr.hbm [resolvable:$true] %s15_s11 }
   0x3   :  { %s17_s13 = sshll.u32 %s434_s12, 4  ;;  %s25_s16 = sshll.u32 %s464_s1, 4  ;;  %s18_s13 = int_to_ptr.vmem [resolvable:$true] %s17_s13  ;;  %s26_s16 = int_to_ptr.hbm [resolvable:$true] %s25_s16 }
   0x4   :  { %20 = dma.hbm_to_vmem [thread:$0]  %s16_s11, 64, %s18_s13, [#allocation3]  }
   0x5   :  { %s435_s17 = smov [#allocation5]   ;;  %s436_s19 = smov 64  }
   0x6   :  { %s27_s18 = sshll.u32 %s435_s17, 4  ;;  %s437_s20 = smov 4   ;;  %s28_s18 = int_to_ptr.vmem [resolvable:$true] %s27_s18 }
   0x7   :  { %33 = dma.hbm_to_vmem [thread:$0]  %s26_s16, 2432, %s28_s18, [#allocation6], %s436_s19, %s436_s19, %s437_s20  }
   0x8   :  { %428 = dma.done.wait [#allocation3], 64  }
   0x9   :  { %429 = vsyncadd [#allocation3], 4294967232 }
   0xa   :  { %430 = dma.done.wait [#allocation6], 2432  }
   0xb   :  { %431 = vsyncadd [#allocation6], 4294964864  ;;  %v334_v0 = vld [vmem:[#allocation5 + $0x8] sm:$0xff]  ;;  %v333_v2 = vld [vmem:[#allocation5] sm:$0xff]  ;;  %vm95_vm0 = vcmask 261120   ;;  %s438_s0 = smov [#allocation7]  }
   0xc   :  { %v342_v1 = vld [vmem:[#allocation5 + $0x48] sm:$0xff]  ;;  %105 = vmatpush.bf16.msra.mxu0 %v334_v0  ;;  %v341_v3 = vld [vmem:[#allocation5 + $0x40] sm:$0xff]  ;;  %v43_v4 = vld [vmem:[#allocation2] sm:$0xf]  ;;  %s247_s1 = sshll.u32 %s438_s0, 4  ;;  %s249_s23 = sshll.u32 %s465_s2, 4  ;;  %s248_s1 = int_to_ptr.vmem [resolvable:$true] %s247_s1  ;;  %s250_s23 = int_to_ptr.hbm [resolvable:$true] %s249_s23 }
   0xd   :  { %163 = vmatpush.bf16.msra.mxu1 %v342_v1  ;;  %v340_v5 = vld [vmem:[#allocation5 + $0x38] sm:$0xff]  ;;  %v339_v6 = vld [vmem:[#allocation5 + $0x30] sm:$0xff]  ;;  %v338_v7 = vld [vmem:[#allocation5 + $0x28] sm:$0xff]  ;;  %vm240_vm1 = vcmask 64512  }
   0xe   :  { %v337_v8 = vld [vmem:[#allocation5 + $0x20] sm:$0xff]  ;;  %v336_v9 = vld [vmem:[#allocation5 + $0x18] sm:$0xff]  ;;  %v335_v10 = vld [vmem:[#allocation5 + $0x10] sm:$0xff] }
   0xf   :  { %v350_v11 = vld [vmem:[#allocation5 + $0x88] sm:$0xff]  ;;  %v349_v12 = vld [vmem:[#allocation5 + $0x80] sm:$0xff]  ;;  %v348_v13 = vld [vmem:[#allocation5 + $0x78] sm:$0xff] }
  0x10   :  { %106 = vmatpush.bf16.msra.mxu0 %v333_v2  ;;  %227 = vmatpush.bf16.msra.mxu2 %v350_v11  ;;  %v347_v14 = vld [vmem:[#allocation5 + $0x70] sm:$0xff]  ;;  %v346_v16 = vld [vmem:[#allocation5 + $0x68] sm:$0xff]  ;;  %v345_v18 = vld [vmem:[#allocation5 + $0x60] sm:$0xff] }
  0x11   :  { %164 = vmatpush.bf16.msra.mxu1 %v341_v3  ;;  %v80_v15 = vld [vmem:[#allocation5 + $0x90] sm:$0xf]  ;;  %v344_v25 = vld [vmem:[#allocation5 + $0x58] sm:$0xff] }
  0x12   :  { %v81_v17 = vunpack.c.l.bf16 %v80_v15  ;;  %v343_v26 = vld [vmem:[#allocation5 + $0x50] sm:$0xff] }
  0x13   :  { %268 = vmatmul.msk.bf16.vlgmr.msra.gmra.mxu0 %vm95_vm0, %v43_v4 }
  0x14   :  { %228 = vmatpush.bf16.msra.mxu2 %v349_v12  ;;  %v82_v19 = vperm.slane %v81_v17, 0  ;;  %v114_v27 = vperm.slane %v81_v17, 1  ;;  %v178_v33 = vperm.slane %v81_v17, 2 }
  0x15   :  { %165 = vmatpush.bf16.msra.mxu1 %v340_v5 }
  0x18   :  { %229 = vmatpush.bf16.msra.mxu2 %v348_v13 }
  0x19   :  { %166 = vmatpush.bf16.msra.mxu1 %v339_v6 }
  0x1c   :  { %230 = vmatpush.bf16.msra.mxu2 %v347_v14 }
  0x1d   :  { %167 = vmatpush.bf16.msra.mxu1 %v338_v7 }
  0x20   :  { %231 = vmatpush.bf16.msra.mxu2 %v346_v16 }
  0x21   :  { %168 = vmatpush.bf16.msra.mxu1 %v337_v8 }
  0x24   :  { %232 = vmatpush.bf16.msra.mxu2 %v345_v18 }
  0x25   :  { %169 = vmatpush.bf16.msra.mxu1 %v336_v9 }
  0x28   :  { %233 = vmatpush.bf16.msra.mxu2 %v344_v25 }
  0x29   :  { %170 = vmatpush.bf16.msra.mxu1 %v335_v10 }
  0x2c   :  { %234 = vmatpush.bf16.msra.mxu2 %v343_v26 }
  0x90   :  { %v108_v20 = vpop.f32.mrf.mxu0 }
  0x91   :  { %v109_v21 = vadd.f32 %v108_v20, %v82_v19 }
  0x93   :  { %v112_v22 = vmax.f32 %v109_v21, 0.0 }
  0x95   :  { %v113_v23 = vpack.c.bf16 %v112_v22, %v112_v22 }
  0x97   :  { %171 = vmatmul.bf16.vlgmr.msra.gmra.mxu1 %v113_v23 }
  0x98   :  { %v110_v24 = vpop.f32.mrf.mxu0 }
 0x114   :  { %v172_v28 = vpop.f32.mrf.mxu1 }
 0x115   :  { %v173_v29 = vadd.f32 %v172_v28, %v114_v27 }
 0x117   :  { %v176_v30 = vmax.f32 %v173_v29, 0.0 }
 0x119   :  { %v177_v31 = vpack.c.bf16 %v176_v30, %v176_v30 }
 0x11b   :  { %235 = vmatmul.bf16.vlgmr.msra.gmra.mxu2 %v177_v31 }
 0x11c   :  { %v174_v32 = vpop.f32.mrf.mxu1 }
 0x19e   :  { %v236_v34 = vpop.f32.mrf.mxu2 }
 0x19f   :  { %v237_v35 = vadd.f32 %v236_v34, %v178_v33 }
 0x1a1   :  { %241 = vst.msk [vmem:[#allocation7] sm:$0xff] %vm240_vm1, %v237_v35 }
 0x1a2   :  { %252 = dma.vmem_to_hbm [thread:$0]  %s248_s1, 128, %s250_s23, [#allocation4]  }
 0x1a6   :  { %v238_v36 = vpop.f32.mrf.mxu2 }
 0x1a7   :  { %432 = dma.done.wait [#allocation4], 128  }
 0x1a8   :  { %433 = vsyncadd [#allocation4], 4294967168 }
 0x1a9   :  { %257 = vsyncpa [#allocation3], 1 }
 0x1aa   :  { %258 = vsyncpa [#allocation6], 1 }
 0x1ab   :  { %259 = vsyncpa [#allocation4], 1 }

</bundles_post_ra>
